<compile_context>
chip_gen: v5e
topology: v5e:2x2
jax: 0.10.0
libtpu: 0.0.40
codegen_flags: <defaults>
</compile_context>

<pallas_src>
from functools import partial

import jax
import jax.numpy as jnp
from jax.experimental import pallas as pl
from jax.experimental.pallas import tpu as pltpu

_LANE = 128


def _round_up(n, m):
    return ((n + m - 1) // m) * m


def _vmem_capacity_bytes():
    """Generation-aware VMEM capacity; conservative fallback if the query fails."""
    try:
        return int(pltpu.get_tpu_info().vmem_capacity_bytes)
    except Exception:
        return 64 * 1024 * 1024  # v7x-sized fallback: safe on every generation


def _attention_kernel(hw_total, c_in_p, c_out_p, ksq_p,
                      inv_temp_ref,      # SMEM (1,) f32 : 1 / temperature
                      x_ref,             # VMEM (b_tile, C_in, hw_tile)
                      wfc_t_ref,         # VMEM (C_in, A)      fc weight, pre-transposed
                      w_heads_ref,       # VMEM (A, N_pad)     fused, 128-padded heads
                      b_heads_ref,       # VMEM (1, N_pad)     fused, 128-padded biases
                      ch_ref,            # VMEM (b_tile, C_in)
                      fl_ref,            # VMEM (b_tile, C_out)
                      sp_ref,            # VMEM (b_tile, ksize*ksize)
                      kn_ref,            # VMEM (b_tile, kernel_num)
                      acc_ref):          # VMEM scratch (b_tile, C_in, acc_w) f32
    k = pl.program_id(1)
    nk = pl.num_programs(1)
    hw_tile = x_ref.shape[-1]
    acc_w = acc_ref.shape[-1]            # 128, or hw_tile when H*W < 128
    n_chunks = hw_tile // acc_w

    # ---- start of a batch tile: zero the widened pooled-sum accumulator ----------
    @pl.when(k == 0)
    def _init():
        acc_ref[...] = jnp.zeros_like(acc_ref)

    def _accumulate(blk):
        # blk: (b_tile, C_in, hw_tile) f32.  Sum lane-tile-aligned 128-wide chunks
        # with pure VPU adds (no cross-lane work, no relayout); the single lane
        # reduce happens once in finalize.
        s = blk[:, :, 0:acc_w]
        for g in range(1, n_chunks):
            s = s + blk[:, :, g * acc_w:(g + 1) * acc_w]
        acc_ref[...] += s

    rem = hw_total % hw_tile
    if rem == 0:
        _accumulate(x_ref[...].astype(jnp.float32))
    else:
        # Only the LAST hw tile pays for the remainder mask.
        @pl.when(k < nk - 1)
        def _bulk():
            _accumulate(x_ref[...].astype(jnp.float32))

        @pl.when(k == nk - 1)
        def _tail():
            blk = x_ref[...].astype(jnp.float32)
            col = jax.lax.broadcasted_iota(jnp.int32, blk.shape, 2)
            _accumulate(jnp.where(col < rem, blk, 0.0))

    # ---- last H*W tile: lane reduce, fc + ReLU + fused heads ----------------------
    @pl.when(k == nk - 1)
    def _finalize():
        c_in = ch_ref.shape[-1]
        c_out = fl_ref.shape[-1]
        ksq = sp_ref.shape[-1]
        knum = kn_ref.shape[-1]

        pooled = jnp.sum(acc_ref[...], axis=-1) * jnp.float32(1.0 / hw_total)  # (b, C_in)
        h = jnp.dot(pooled, wfc_t_ref[...], preferred_element_type=jnp.float32)
        h = jnp.maximum(h, 0.0)                                                 # (b, A)

        logits = (jnp.dot(h, w_heads_ref[...], preferred_element_type=jnp.float32)
                  + b_heads_ref[...]) * inv_temp_ref[0]                         # (b, N_pad)

        # Lane-aligned segment starts (each segment zero-padded to a multiple of 128).
        o1 = c_in_p
        o2 = c_in_p + c_out_p
        o3 = c_in_p + c_out_p + ksq_p
        ch_ref[...] = jax.nn.sigmoid(logits[:, 0:c_in])
        fl_ref[...] = jax.nn.sigmoid(logits[:, o1:o1 + c_out])
        sp_ref[...] = jax.nn.sigmoid(logits[:, o2:o2 + ksq])

        kn = logits[:, o3:o3 + knum]
        kn = kn - jnp.max(kn, axis=-1, keepdims=True)
        e = jnp.exp(kn)
        kn_ref[...] = e / jnp.sum(e, axis=-1, keepdims=True)   # exact divide


def _pick_tiles(B, c_in, hw, itemsize, vmem_cap):
    """Choose (b_tile, hw_tile) for x blocks of shape (b_tile, c_in, hw_tile).

    b_tile is the full batch (when B <= 8) or 8 (multiple-of-8 sublane rule for the
    (b_tile, N) outputs; B >= 16 then gives >= 2 'parallel' batch steps, keeping both
    v7x TensorCores busy).  hw_tile is the full H*W when H*W < 128, otherwise a
    multiple of 128 grown toward the per-block VMEM budget so the double-buffered
    x blocks plus the widened f32 accumulator stay within ~half of VMEM.
    """
    b_tile = B if B <= 8 else 8
    # TODO(synk): for tiny B on v7x the H*W reduction itself could be split across the
    # two TensorCores and combined; not implemented (single batch grid step then).

    if hw < _LANE:
        return b_tile, hw                      # must take the full (tiny) extent

    acc_bytes = b_tile * c_in * _LANE * 4      # widened f32 accumulator
    usable = vmem_cap // 2                     # headroom for weights/outputs/scratch
    per_block = max(b_tile * c_in * _LANE * itemsize,   # never below one lane tile
                    (usable - acc_bytes) // 2)          # 2 = double buffering

    hw_tile = per_block // (b_tile * c_in * itemsize)
    hw_tile = max(_LANE, (hw_tile // _LANE) * _LANE)
    hw_cap = hw if hw % _LANE == 0 else (hw // _LANE) * _LANE
    hw_tile = min(hw_tile, hw_cap, 8192)       # 8192 bounds the unrolled chunk adds
    return b_tile, hw_tile


def odconv_attention(x, params, *, kernel_size, kernel_num, temperature=1.0):
    """Returns (channel_attn, filter_attn, spatial_attn, kernel_attn), exactly as the
    PyTorch module's forward().  x may be float32 or bfloat16 (math stays f32)."""
    # TODO(synk): the static skip() config branches (groups==in_planes==out_planes,
    # kernel_size==1, kernel_num==1 -> constant 1.0) are not implemented; all four
    # heads are assumed active.
    B, C_in, H, W = x.shape
    HW = H * W
    wfc, wch, bch, wfl, bfl, wsp, bsp, wkn, bkn = params
    A = wfc.shape[0]
    C_out = wfl.shape[0]
    ksq = kernel_size * kernel_size

    # Host-side prep (cheap, amortized): flatten spatial dims, pre-transpose the fc
    # weight, fuse the four head projections into one lane-dense matmul whose per-head
    # segments are zero-padded to multiples of 128 columns (lane-aligned slices).
    x3 = x.reshape(B, C_in, HW)
    wfc_t = wfc.astype(jnp.float32).T                                    # (C_in, A)

    def padded_head(w, b, out_p):
        out_dim = w.shape[0]
        wp = jnp.zeros((A, out_p), jnp.float32).at[:, :out_dim].set(w.astype(jnp.float32).T)
        bp = jnp.zeros((out_p,), jnp.float32).at[:out_dim].set(b.astype(jnp.float32))
        return wp, bp

    c_in_p = _round_up(C_in, _LANE)
    c_out_p = _round_up(C_out, _LANE)
    ksq_p = _round_up(ksq, _LANE)
    kn_p = _round_up(kernel_num, _LANE)
    n_pad = c_in_p + c_out_p + ksq_p + kn_p

    w_ch, b_ch = padded_head(wch, bch, c_in_p)
    w_fl, b_fl = padded_head(wfl, bfl, c_out_p)
    w_sp, b_sp = padded_head(wsp, bsp, ksq_p)
    w_kn, b_kn = padded_head(wkn, bkn, kn_p)
    w_heads = jnp.concatenate([w_ch, w_fl, w_sp, w_kn], axis=1)          # (A, N_pad)
    b_heads = jnp.concatenate([b_ch, b_fl, b_sp, b_kn]).reshape(1, n_pad)
    inv_temp = (jnp.float32(1.0) / jnp.asarray(temperature, jnp.float32)).reshape(1)

    vmem_cap = _vmem_capacity_bytes()
    vmem_limit = max(32 * 1024 * 1024, min(vmem_cap * 3 // 4, 96 * 1024 * 1024))
    b_tile, hw_tile = _pick_tiles(B, C_in, HW, x3.dtype.itemsize, vmem_cap)
    acc_w = _LANE if hw_tile >= _LANE else hw_tile
    grid = (pl.cdiv(B, b_tile), pl.cdiv(HW, hw_tile))

    in_specs = [
        pl.BlockSpec(memory_space=pltpu.MemorySpace.SMEM),                 # inv_temp
        # If a profile ever shows exposed DMA between steps, add
        # pipeline_mode=pl.Buffered(3) here (costs one extra x block of VMEM).
        pl.BlockSpec((b_tile, C_in, hw_tile), lambda b, k: (b, 0, k)),     # x
        pl.BlockSpec((C_in, A), lambda b, k: (0, 0)),                      # wfc_t
        pl.BlockSpec((A, n_pad), lambda b, k: (0, 0)),                     # w_heads
        pl.BlockSpec((1, n_pad), lambda b, k: (0, 0)),                     # b_heads
    ]
    out_specs = (
        pl.BlockSpec((b_tile, C_in), lambda b, k: (b, 0)),
        pl.BlockSpec((b_tile, C_out), lambda b, k: (b, 0)),
        pl.BlockSpec((b_tile, ksq), lambda b, k: (b, 0)),
        pl.BlockSpec((b_tile, kernel_num), lambda b, k: (b, 0)),
    )
    out_shapes = (
        jax.ShapeDtypeStruct((B, C_in), jnp.float32),
        jax.ShapeDtypeStruct((B, C_out), jnp.float32),
        jax.ShapeDtypeStruct((B, ksq), jnp.float32),
        jax.ShapeDtypeStruct((B, kernel_num), jnp.float32),
    )

    ch, fl, sp, kn = pl.pallas_call(
        partial(_attention_kernel, HW, c_in_p, c_out_p, ksq_p),
        grid=grid,
        in_specs=in_specs,
        out_specs=out_specs,
        out_shape=out_shapes,
        scratch_shapes=[pltpu.VMEM((b_tile, C_in, acc_w), jnp.float32)],
        compiler_params=pltpu.CompilerParams(
            dimension_semantics=("parallel", "arbitrary"),
            vmem_limit_bytes=vmem_limit),
    )(inv_temp, x3, wfc_t, w_heads, b_heads)

    channel_attention = ch.reshape(B, C_in, 1, 1)
    filter_attention = fl.reshape(B, C_out, 1, 1)
    spatial_attention = sp.reshape(B, 1, 1, 1, kernel_size, kernel_size)
    kernel_attention = kn.reshape(B, kernel_num, 1, 1, 1, 1)
    return channel_attention, filter_attention, spatial_attention, kernel_attention


def init_params(key, in_planes, out_planes, kernel_size, kernel_num,
                reduction=0.0625, min_channel=16):
    """Matches the module's _initialize_weights: kaiming_normal_(fan_out, relu) for the
    1x1 conv weights, biases = 0."""
    A = max(int(in_planes * reduction), min_channel)
    ks = jax.random.split(key, 5)

    def kaiming(k, out_c, in_c):
        return jax.random.normal(k, (out_c, in_c), jnp.float32) * jnp.sqrt(2.0 / out_c)

    wfc = kaiming(ks[0], A, in_planes)
    wch = kaiming(ks[1], in_planes, A)
    bch = jnp.zeros((in_planes,), jnp.float32)
    wfl = kaiming(ks[2], out_planes, A)
    bfl = jnp.zeros((out_planes,), jnp.float32)
    wsp = kaiming(ks[3], kernel_size * kernel_size, A)
    bsp = jnp.zeros((kernel_size * kernel_size,), jnp.float32)
    wkn = kaiming(ks[4], kernel_num, A)
    bkn = jnp.zeros((kernel_num,), jnp.float32)
    return (wfc, wch, bch, wfl, bfl, wsp, bsp, wkn, bkn), A


def reference(x, params, *, kernel_size, kernel_num, temperature=1.0):
    """Plain-JAX replica of the PyTorch forward (sanity check)."""
    wfc, wch, bch, wfl, bfl, wsp, bsp, wkn, bkn = params
    B = x.shape[0]
    pooled = x.astype(jnp.float32).mean(axis=(2, 3))
    h = jnp.maximum(pooled @ wfc.T, 0.0)
    ch = jax.nn.sigmoid((h @ wch.T + bch) / temperature).reshape(B, -1, 1, 1)
    fl = jax.nn.sigmoid((h @ wfl.T + bfl) / temperature).reshape(B, -1, 1, 1)
    sp = jax.nn.sigmoid((h @ wsp.T + bsp) / temperature).reshape(
        B, 1, 1, 1, kernel_size, kernel_size)
    kn = jax.nn.softmax((h @ wkn.T + bkn) / temperature, axis=-1).reshape(
        B, kernel_num, 1, 1, 1, 1)
    return ch, fl, sp, kn


if __name__ == "__main__":
    # Small shapes consistent with the module.
    B, in_planes, out_planes, H, W = 2, 4, 8, 16, 16
    kernel_size, kernel_num = 3, 4

    key = jax.random.PRNGKey(0)
    k_x, k_p = jax.random.split(key)
    x = jax.random.normal(k_x, (B, in_planes, H, W), jnp.float32)  # NCHW, like PyTorch
    params, att_ch = init_params(k_p, in_planes, out_planes, kernel_size, kernel_num)

    outs = odconv_attention(x, params, kernel_size=kernel_size,
                            kernel_num=kernel_num, temperature=1.0)
    outs = jax.block_until_ready(outs)

    refs = reference(x, params, kernel_size=kernel_size,
                     kernel_num=kernel_num, temperature=1.0)
    for o, r in zip(outs, refs):
        assert o.shape == r.shape, (o.shape, r.shape)
        err = float(jnp.max(jnp.abs(o - r)))
        assert jnp.allclose(o, r, atol=1e-4, rtol=1e-4), err

    # bfloat16-input path (recommended on bandwidth-starved chips); the kernel keeps
    # f32 accumulation, so only the input-quantization error remains.
    outs_bf16 = odconv_attention(x.astype(jnp.bfloat16), params,
                                 kernel_size=kernel_size, kernel_num=kernel_num,
                                 temperature=1.0)
    outs_bf16 = jax.block_until_ready(outs_bf16)
    for o, r in zip(outs_bf16, refs):
        err = float(jnp.max(jnp.abs(o - r)))
        assert jnp.allclose(o, r, atol=5e-2, rtol=5e-2), err

    print("KERNEL_OK")
</pallas_src>

<mosaic_0001>
module attributes {stable_mosaic.version = 11 : i64} {
  func.func @_attention_kernel(%arg0: i32, %arg1: i32, %arg2: memref<1xf32, #tpu.memory_space<smem>>, %arg3: memref<2x4x256xf32, #tpu.memory_space<vmem>>, %arg4: memref<4x16xf32, #tpu.memory_space<vmem>>, %arg5: memref<16x512xf32, #tpu.memory_space<vmem>>, %arg6: memref<1x512xf32, #tpu.memory_space<vmem>>, %arg7: memref<2x4xf32, #tpu.memory_space<vmem>>, %arg8: memref<2x8xf32, #tpu.memory_space<vmem>>, %arg9: memref<2x9xf32, #tpu.memory_space<vmem>>, %arg10: memref<2x4xf32, #tpu.memory_space<vmem>>, %arg11: memref<2x4x128xf32, #tpu.memory_space<vmem>>) attributes {dimension_semantics = [#tpu.dimension_semantics<parallel>, #tpu.dimension_semantics<arbitrary>], iteration_bounds = array<i64: 1, 1>, scalar_prefetch = 0 : i64, scratch_operands = 1 : i64, tpu.core_type = #tpu.core_type<tc>, window_params = [{transform_indices = @transform_0, window_bounds = array<i64: 1>}, {transform_indices = @transform_1, window_bounds = array<i64: 2, 4, 256>}, {pipeline_mode = #tpu.pipeline_mode<synchronous>, transform_indices = @transform_2, window_bounds = array<i64: 4, 16>}, {pipeline_mode = #tpu.pipeline_mode<synchronous>, transform_indices = @transform_3, window_bounds = array<i64: 16, 512>}, {pipeline_mode = #tpu.pipeline_mode<synchronous>, transform_indices = @transform_4, window_bounds = array<i64: 1, 512>}, {transform_indices = @transform_5, window_bounds = array<i64: 2, 4>}, {transform_indices = @transform_6, window_bounds = array<i64: 2, 8>}, {transform_indices = @transform_7, window_bounds = array<i64: 2, 9>}, {transform_indices = @transform_8, window_bounds = array<i64: 2, 4>}]} {
    %c0_i32 = arith.constant 0 : i32
    %0 = arith.cmpi eq, %arg1, %c0_i32 : i32
    %1 = arith.extui %0 : i1 to i32
    %c0_i32_0 = arith.constant 0 : i32
    %2 = arith.cmpi ne, %1, %c0_i32_0 : i32
    scf.if %2 {
      %cst = arith.constant 0.000000e+00 : f32
      %13 = vector.broadcast %cst : f32 to vector<2x4x128xf32>
      %c0_11 = arith.constant 0 : index
      %c0_12 = arith.constant 0 : index
      %c0_13 = arith.constant 0 : index
      %14 = vector.load %arg11[%c0_11, %c0_12, %c0_13] : memref<2x4x128xf32, #tpu.memory_space<vmem>>, vector<2x4x128xf32>
      tpu.vector_store %arg11[%c0_11, %c0_12, %c0_13], %13 {strides = array<i32>} : memref<2x4x128xf32, #tpu.memory_space<vmem>>, vector<2x4x128xf32>,
    } else {
    }
    %c0 = arith.constant 0 : index
    %c0_1 = arith.constant 0 : index
    %c0_2 = arith.constant 0 : index
    %3 = vector.load %arg3[%c0, %c0_1, %c0_2] : memref<2x4x256xf32, #tpu.memory_space<vmem>>, vector<2x4x256xf32>
    %4 = vector.extract_strided_slice %3 {offsets = [0, 0, 0], sizes = [2, 4, 128], strides = [1, 1, 1]} : vector<2x4x256xf32> to vector<2x4x128xf32>
    %5 = vector.extract_strided_slice %3 {offsets = [0, 0, 128], sizes = [2, 4, 128], strides = [1, 1, 1]} : vector<2x4x256xf32> to vector<2x4x128xf32>
    %6 = arith.addf %4, %5 : vector<2x4x128xf32>
    %c0_3 = arith.constant 0 : index
    %c0_4 = arith.constant 0 : index
    %c0_5 = arith.constant 0 : index
    %7 = vector.load %arg11[%c0_3, %c0_4, %c0_5] : memref<2x4x128xf32, #tpu.memory_space<vmem>>, vector<2x4x128xf32>
    %8 = arith.addf %7, %6 : vector<2x4x128xf32>
    %c0_6 = arith.constant 0 : index
    %c0_7 = arith.constant 0 : index
    %c0_8 = arith.constant 0 : index
    %9 = vector.load %arg11[%c0_6, %c0_7, %c0_8] : memref<2x4x128xf32, #tpu.memory_space<vmem>>, vector<2x4x128xf32>
    tpu.vector_store %arg11[%c0_6, %c0_7, %c0_8], %8 {strides = array<i32>} : memref<2x4x128xf32, #tpu.memory_space<vmem>>, vector<2x4x128xf32>,
    %c0_i32_9 = arith.constant 0 : i32
    %10 = arith.cmpi eq, %arg1, %c0_i32_9 : i32
    %11 = arith.extui %10 : i1 to i32
    %c0_i32_10 = arith.constant 0 : i32
    %12 = arith.cmpi ne, %11, %c0_i32_10 : i32
    scf.if %12 {
      %c0_11 = arith.constant 0 : index
      %c0_12 = arith.constant 0 : index
      %c0_13 = arith.constant 0 : index
      %13 = vector.load %arg11[%c0_11, %c0_12, %c0_13] : memref<2x4x128xf32, #tpu.memory_space<vmem>>, vector<2x4x128xf32>
      %cst = arith.constant dense<0.000000e+00> : vector<2x4xf32>
      %14 = vector.multi_reduction <add>, %13, %cst [2] : vector<2x4x128xf32> to vector<2x4xf32>
      %cst_14 = arith.constant 3.906250e-03 : f32
      %15 = vector.broadcast %cst_14 : f32 to vector<2x4xf32>
      %16 = arith.mulf %14, %15 : vector<2x4xf32>
      %c0_15 = arith.constant 0 : index
      %c0_16 = arith.constant 0 : index
      %17 = vector.load %arg4[%c0_15, %c0_16] : memref<4x16xf32, #tpu.memory_space<vmem>>, vector<4x16xf32>
      %cst_17 = arith.constant dense<0.000000e+00> : vector<2x16xf32>
      %18 = tpu.matmul %16, %17, %cst_17 {dimension_numbers = #tpu.dot_dimension_numbers<[1], [0], [0], [1], [0, 0, 1, 1], [], []>} : vector<2x4xf32>, vector<4x16xf32>, vector<2x16xf32> -> vector<2x16xf32>
      %cst_18 = arith.constant 0.000000e+00 : f32
      %19 = vector.broadcast %cst_18 : f32 to vector<2x16xf32>
      %20 = arith.maximumf %18, %19 : vector<2x16xf32>
      %c0_19 = arith.constant 0 : index
      %c0_20 = arith.constant 0 : index
      %21 = vector.load %arg5[%c0_19, %c0_20] : memref<16x512xf32, #tpu.memory_space<vmem>>, vector<16x512xf32>
      %cst_21 = arith.constant dense<0.000000e+00> : vector<2x512xf32>
      %22 = tpu.matmul %20, %21, %cst_21 {dimension_numbers = #tpu.dot_dimension_numbers<[1], [0], [0], [1], [0, 0, 1, 1], [], []>} : vector<2x16xf32>, vector<16x512xf32>, vector<2x512xf32> -> vector<2x512xf32>
      %c0_22 = arith.constant 0 : index
      %c0_23 = arith.constant 0 : index
      %23 = vector.load %arg6[%c0_22, %c0_23] : memref<1x512xf32, #tpu.memory_space<vmem>>, vector<1x512xf32>
      %24 = vector.broadcast %23 : vector<1x512xf32> to vector<2x512xf32>
      %25 = arith.addf %22, %24 : vector<2x512xf32>
      %c0_24 = arith.constant 0 : index
      %26 = memref.load %arg2[%c0_24] : memref<1xf32, #tpu.memory_space<smem>>
      %27 = vector.broadcast %26 : f32 to vector<2x512xf32>
      %28 = arith.mulf %25, %27 : vector<2x512xf32>
      %29 = vector.extract_strided_slice %28 {offsets = [0, 0], sizes = [2, 4], strides = [1, 1]} : vector<2x512xf32> to vector<2x4xf32>
      %30 = arith.negf %29 : vector<2x4xf32>
      %31 = math.exp %30 : vector<2x4xf32>
      %cst_25 = arith.constant 1.000000e+00 : f32
      %32 = vector.broadcast %cst_25 : f32 to vector<2x4xf32>
      %33 = arith.addf %32, %31 : vector<2x4xf32>
      %34 = arith.divf %32, %33 : vector<2x4xf32>
      %c0_26 = arith.constant 0 : index
      %c0_27 = arith.constant 0 : index
      %35 = vector.load %arg7[%c0_26, %c0_27] : memref<2x4xf32, #tpu.memory_space<vmem>>, vector<2x4xf32>
      tpu.vector_store %arg7[%c0_26, %c0_27], %34 {strides = array<i32>} : memref<2x4xf32, #tpu.memory_space<vmem>>, vector<2x4xf32>,
      %36 = vector.extract_strided_slice %28 {offsets = [0, 128], sizes = [2, 8], strides = [1, 1]} : vector<2x512xf32> to vector<2x8xf32>
      %37 = arith.negf %36 : vector<2x8xf32>
      %38 = math.exp %37 : vector<2x8xf32>
      %cst_28 = arith.constant 1.000000e+00 : f32
      %39 = vector.broadcast %cst_28 : f32 to vector<2x8xf32>
      %40 = arith.addf %39, %38 : vector<2x8xf32>
      %41 = arith.divf %39, %40 : vector<2x8xf32>
      %c0_29 = arith.constant 0 : index
      %c0_30 = arith.constant 0 : index
      %42 = vector.load %arg8[%c0_29, %c0_30] : memref<2x8xf32, #tpu.memory_space<vmem>>, vector<2x8xf32>
      tpu.vector_store %arg8[%c0_29, %c0_30], %41 {strides = array<i32>} : memref<2x8xf32, #tpu.memory_space<vmem>>, vector<2x8xf32>,
      %43 = vector.extract_strided_slice %28 {offsets = [0, 256], sizes = [2, 9], strides = [1, 1]} : vector<2x512xf32> to vector<2x9xf32>
      %44 = arith.negf %43 : vector<2x9xf32>
      %45 = math.exp %44 : vector<2x9xf32>
      %cst_31 = arith.constant 1.000000e+00 : f32
      %46 = vector.broadcast %cst_31 : f32 to vector<2x9xf32>
      %47 = arith.addf %46, %45 : vector<2x9xf32>
      %48 = arith.divf %46, %47 : vector<2x9xf32>
      %c0_32 = arith.constant 0 : index
      %c0_33 = arith.constant 0 : index
      %49 = vector.load %arg9[%c0_32, %c0_33] : memref<2x9xf32, #tpu.memory_space<vmem>>, vector<2x9xf32>
      tpu.vector_store %arg9[%c0_32, %c0_33], %48 {strides = array<i32>} : memref<2x9xf32, #tpu.memory_space<vmem>>, vector<2x9xf32>,
      %50 = vector.extract_strided_slice %28 {offsets = [0, 384], sizes = [2, 4], strides = [1, 1]} : vector<2x512xf32> to vector<2x4xf32>
      %cst_34 = arith.constant dense<0xFF800000> : vector<2xf32>
      %51 = vector.multi_reduction <maximumf>, %50, %cst_34 [1] : vector<2x4xf32> to vector<2xf32>
      %52 = vector.shape_cast %51 : vector<2xf32> to vector<2x1xf32>
      %53 = vector.broadcast %52 : vector<2x1xf32> to vector<2x4xf32>
      %54 = arith.subf %50, %53 : vector<2x4xf32>
      %55 = math.exp %54 : vector<2x4xf32>
      %cst_35 = arith.constant dense<0.000000e+00> : vector<2xf32>
      %56 = vector.multi_reduction <add>, %55, %cst_35 [1] : vector<2x4xf32> to vector<2xf32>
      %57 = vector.shape_cast %56 : vector<2xf32> to vector<2x1xf32>
      %58 = vector.broadcast %57 : vector<2x1xf32> to vector<2x4xf32>
      %59 = arith.divf %55, %58 : vector<2x4xf32>
      %c0_36 = arith.constant 0 : index
      %c0_37 = arith.constant 0 : index
      %60 = vector.load %arg10[%c0_36, %c0_37] : memref<2x4xf32, #tpu.memory_space<vmem>>, vector<2x4xf32>
      tpu.vector_store %arg10[%c0_36, %c0_37], %59 {strides = array<i32>} : memref<2x4xf32, #tpu.memory_space<vmem>>, vector<2x4xf32>,
    } else {
    }
    return
  }
  func.func @transform_0(%arg0: i32, %arg1: i32) -> i32 {
    %c0_i32 = arith.constant 0 : i32
    %c0_i32_0 = arith.constant 0 : i32
    return %c0_i32 : i32
  }
  func.func @transform_1(%arg0: i32, %arg1: i32) -> (i32, i32, i32) {
    %c0_i32 = arith.constant 0 : i32
    %c0_i32_0 = arith.constant 0 : i32
    return %arg0, %c0_i32, %arg1 : i32, i32, i32
  }
  func.func @transform_2(%arg0: i32, %arg1: i32) -> (i32, i32) {
    %c0_i32 = arith.constant 0 : i32
    %c0_i32_0 = arith.constant 0 : i32
    %c0_i32_1 = arith.constant 0 : i32
    return %c0_i32, %c0_i32_0 : i32, i32
  }
  func.func @transform_3(%arg0: i32, %arg1: i32) -> (i32, i32) {
    %c0_i32 = arith.constant 0 : i32
    %c0_i32_0 = arith.constant 0 : i32
    %c0_i32_1 = arith.constant 0 : i32
    return %c0_i32, %c0_i32_0 : i32, i32
  }
  func.func @transform_4(%arg0: i32, %arg1: i32) -> (i32, i32) {
    %c0_i32 = arith.constant 0 : i32
    %c0_i32_0 = arith.constant 0 : i32
    %c0_i32_1 = arith.constant 0 : i32
    return %c0_i32, %c0_i32_0 : i32, i32
  }
  func.func @transform_5(%arg0: i32, %arg1: i32) -> (i32, i32) {
    %c0_i32 = arith.constant 0 : i32
    %c0_i32_0 = arith.constant 0 : i32
    return %arg0, %c0_i32 : i32, i32
  }
  func.func @transform_6(%arg0: i32, %arg1: i32) -> (i32, i32) {
    %c0_i32 = arith.constant 0 : i32
    %c0_i32_0 = arith.constant 0 : i32
    return %arg0, %c0_i32 : i32, i32
  }
  func.func @transform_7(%arg0: i32, %arg1: i32) -> (i32, i32) {
    %c0_i32 = arith.constant 0 : i32
    %c0_i32_0 = arith.constant 0 : i32
    return %arg0, %c0_i32 : i32, i32
  }
  func.func @transform_8(%arg0: i32, %arg1: i32) -> (i32, i32) {
    %c0_i32 = arith.constant 0 : i32
    %c0_i32_0 = arith.constant 0 : i32
    return %arg0, %c0_i32 : i32, i32
  }
}

</mosaic_0001>

<bundles_post_ra>
// kernel: tpu_custom_call.1
= control target key start
LH: loop header
LB: loop body
LE: loop exit
PB: predicated region body
PF: predicated region fallthrough
CT: control target
= control target key end

     0   :  { %15 = vsyncpa [#allocation5], 0  ;;  %s713_s0 = inlined_call_operand.<no memory space> [shape: f32[1], index: 0, kind: input, shape index: {}]   ;;  %s714_s1 = inlined_call_operand.hbm [shape: f32[2,4,256], index: 1, kind: input, shape index: {}]   ;;  %s715_s2 = inlined_call_operand.hbm [shape: f32[4,16], index: 2, kind: input, shape index: {}]   ;;  %s716_s3 = inlined_call_operand.hbm [shape: f32[16,512], index: 3, kind: input, shape index: {}]   ;;  %s717_s4 = inlined_call_operand.vmem [shape: f32[1,512], index: 4, kind: input, shape index: {}]   ;;  %s718_s5 = inlined_call_operand.hbm [shape: f32[2,4], index: 5, kind: output, shape index: {0}]   ;;  %s719_s6 = inlined_call_operand.hbm [shape: f32[2,8], index: 6, kind: output, shape index: {1}]   ;;  %s720_s7 = inlined_call_operand.hbm [shape: f32[2,9], index: 7, kind: output, shape index: {2}]   ;;  %s721_s8 = inlined_call_operand.hbm [shape: f32[2,4], index: 8, kind: output, shape index: {3}]  }
   0x1   :  { %16 = vsyncpa [#allocation8], 0 }
   0x2   :  { %17 = vsyncpa [#allocation6], 0 }
   0x3   :  { %18 = vsyncpa [#allocation12], 0  ;;  %s40_s29 = sshll.u32 %s715_s2, 4  ;;  %s41_s29 = int_to_ptr.hbm [resolvable:$true] %s40_s29 }
   0x4   :  { %19 = vsyncpa [#allocation15], 0  ;;  %s621_s30 = smov [#allocation7]   ;;  %s26_s12 = sshll.u32 %s714_s1, 4  ;;  %s27_s12 = int_to_ptr.hbm [resolvable:$true] %s26_s12 }
   0x5   :  { %s42_s9 = sshll.u32 %s621_s30, 4  ;;  %s622_s13 = smov [#allocation4]   ;;  %s43_s9 = int_to_ptr.vmem [resolvable:$true] %s42_s9 }
   0x6   :  { %45 = dma.hbm_to_vmem [thread:$0]  %s41_s29, 64, %s43_s9, [#allocation8]  }
   0x7   :  { %s28_s14 = sshll.u32 %s622_s13, 4  ;;  %s623_s15 = smov 128   ;;  %s29_s14 = int_to_ptr.vmem [resolvable:$true] %s28_s14 }
   0x8   :  { %s624_s16 = smov 8   ;;  %s50_s2 = sshll.u32 %s716_s3, 4  ;;  %s51_s2 = int_to_ptr.hbm [resolvable:$true] %s50_s2 }
   0x9   :  { %34 = dma.hbm_to_vmem [thread:$0]  %s27_s12, 256, %s29_s14, [#allocation5], %s623_s15, %s623_s15, %s624_s16  }
   0xa   :  { %s625_s19 = smov [#allocation9]   ;;  %s626_s21 = smov 512  }
   0xb   :  { %s52_s20 = sshll.u32 %s625_s19, 4  ;;  %s627_s22 = smov 32   ;;  %s53_s20 = int_to_ptr.vmem [resolvable:$true] %s52_s20 }
   0xc   :  { %58 = dma.hbm_to_vmem [thread:$0]  %s51_s2, 1024, %s53_s20, [#allocation8], %s626_s21, %s626_s21, %s627_s22  }
   0xd   :  { %611 = dma.done.wait [#allocation5], 256  }
   0xe   :  { %612 = vsyncadd [#allocation5], 4294967040 }
   0xf   :  { %613 = dma.done.wait [#allocation8], 1088  }
  0x10   :  { %614 = vsyncadd [#allocation8], 4294966208  ;;  %v628_v0 = vmov 0.0   ;;  %v79_v1 = vld [vmem:[#allocation4] sm:$0xff]  ;;  %v80_v2 = vld [vmem:[#allocation4 + $0x8] sm:$0xff]  ;;  %vm100_vm0 = vcmask 1043456   ;;  %v112_v19 = vlaneseq  ;;  %v248_v39 = vstv %s713_s0 }
  0x11   :  { %77 = vst [vmem:[#allocation2] sm:$0xf] %v628_v0  ;;  %v83_v3 = vrot.slane %v79_v1, 4  ;;  %v84_v4 = vrot.slane %v80_v2, 4  ;;  %v109_v15 = vld [vmem:[#allocation7] sm:$0xf] }
  0x12   :  { %78 = vst [vmem:[#allocation2 + $0x4] sm:$0xf] %v628_v0  ;;  %406 = vmatpush.msk.msra.mxu0 %vm100_vm0, %v109_v15  ;;  %v152_v16 = vld [vmem:[#allocation9 + $0x38] sm:$0xff]  ;;  %v113_v20 = vand.u32 127, %v112_v19  ;;  %vm116_vm1 = vcmask 1041409   ;;  %vm118_vm2 = vcmask 31744  }
  0x13   :  { %v87_v7 = vadd.f32 %v83_v3, %v79_v1  ;;  %v88_v8 = vadd.f32 %v84_v4, %v80_v2  ;;  %v148_v17 = vld [vmem:[#allocation9 + $0x18] sm:$0xff]  ;;  %v149_v27 = vld [vmem:[#allocation9 + $0x20] sm:$0xff]  ;;  %v150_v28 = vld [vmem:[#allocation9 + $0x28] sm:$0xff]  ;;  %vm163_vm3 = vcmask 130048   ;;  %vm272_vm4 = vcmask 25600   ;;  %s359_s25 = sshll.u32 %s719_s6, 4  ;;  %s360_s25 = int_to_ptr.hbm [resolvable:$true] %s359_s25 }
  0x14   :  { %241 = vmatpush.msrb.mxu0 %v152_v16  ;;  %v151_v29 = vld [vmem:[#allocation9 + $0x30] sm:$0xff]  ;;  %181 = vmatpush.msra.mxu1 %v149_v27  ;;  %v145_v30 = vld [vmem:[#allocation9] sm:$0xff]  ;;  %v146_v31 = vld [vmem:[#allocation9 + $0x8] sm:$0xff]  ;;  %vm293_vm13 = vcmask 58368   ;;  %s629_s26 = smov [#allocation11]   ;;  %s630_s28 = smov [#allocation10]  }
  0x15   :  { %201 = vmatpush.msra.mxu2 %v150_v28  ;;  %221 = vmatpush.msra.mxu3 %v151_v29  ;;  %v147_v32 = vld [vmem:[#allocation9 + $0x10] sm:$0xff]  ;;  %v153_v35 = vld [vmem:[%s717_s4] sm:$0xf]  ;;  %s357_s27 = sshll.u32 %s629_s26, 4  ;;  %s346_s29 = sshll.u32 %s630_s28, 4  ;;  %s358_s27 = int_to_ptr.vmem [resolvable:$true] %s357_s27  ;;  %s347_s29 = int_to_ptr.vmem [resolvable:$true] %s346_s29 }
  0x16   :  { %242 = vmatpush.msrb.mxu0 %v148_v17  ;;  %182 = vmatpush.msra.mxu1 %v145_v30  ;;  %v155_v36 = vperm.slane %v153_v35, 0  ;;  %v158_v37 = vperm.slane %v153_v35, 3  ;;  %v156_v44 = vperm.slane %v153_v35, 1  ;;  %v157_v46 = vperm.slane %v153_v35, 2  ;;  %s348_s10 = sshll.u32 %s718_s5, 4  ;;  %s370_s13 = sshll.u32 %s720_s7, 4  ;;  %s349_s10 = int_to_ptr.hbm [resolvable:$true] %s348_s10  ;;  %s371_s13 = int_to_ptr.hbm [resolvable:$true] %s370_s13 }
  0x17   :  { %202 = vmatpush.msra.mxu2 %v146_v31  ;;  %222 = vmatpush.msra.mxu3 %v147_v32  ;;  %s631_s14 = smov [#allocation13]   ;;  %s632_s5 = smov [#allocation14]  }
  0x18   :  { %v89_v5 = vld [vmem:[#allocation2] sm:$0xf]  ;;  %s368_s6 = sshll.u32 %s631_s14, 4  ;;  %s379_s7 = sshll.u32 %s632_s5, 4  ;;  %s369_s6 = int_to_ptr.vmem [resolvable:$true] %s368_s6  ;;  %s380_s7 = int_to_ptr.vmem [resolvable:$true] %s379_s7 }
  0x19   :  { %v90_v6 = vld [vmem:[#allocation2 + $0x4] sm:$0xf]  ;;  %v91_v9 = vadd.f32 %v89_v5, %v87_v7  ;;  %s381_s17 = sshll.u32 %s721_s8, 4  ;;  %s382_s17 = int_to_ptr.hbm [resolvable:$true] %s381_s17 }
  0x1a   :  { %v92_v10 = vadd.f32 %v90_v6, %v88_v8 }
  0x1b   :  { %93 = vst [vmem:[#allocation2] sm:$0xf] %v91_v9 }
  0x1c   :  { %94 = vst [vmem:[#allocation2 + $0x4] sm:$0xf] %v92_v10 }
  0x22   :  { %v98_v11 = vld [vmem:[#allocation2] sm:$0xf] }
  0x23   :  { %v101_v12 = vsel %vm100_vm0, %v98_v11, 0.0  ;;  %v99_v13 = vld [vmem:[#allocation2 + $0x4] sm:$0xf] }
  0x24   :  { %102 = vadd.xlane.f32.xlu0 %v101_v12  ;;  %v104_v14 = vsel %vm100_vm0, %v99_v13, 0.0 }
  0x2c   :  { %105 = vadd.xlane.f32.xlu0 %v104_v14 }
  0x97   :  { %v103_v18 = vpop.xlane.xlu0 %102 }
  0x98   :  { %v107_v21 = vmul.f32 0.00390625, %v103_v18 }
  0x9a   :  { %v114_v24 = vperm.slane %v107_v21, %v113_v20 }
  0x9f   :  { %v106_v22 = vpop.xlane.xlu0 %105 }
  0xa0   :  { %v108_v23 = vmul.f32 0.00390625, %v106_v22 }
  0xa2   :  { %v115_v25 = vperm.slane %v108_v23, %v113_v20 }
  0xa4   :  { %v117_v26 = vsel %vm116_vm1, %v115_v25, %v114_v24  ;;  %vm314_vm1 = vcmask 66560  }
  0xa5   :  { %407 = vmatmul.msk.f32.vlgmr.msra.gmra.mxu0 %vm118_vm2, %v117_v26 }
 0x122   :  { %v141_v33 = vpop.f32.mrf.mxu0 }
 0x123   :  { %v144_v34 = vmax.f32 %v141_v33, 0.0 }
 0x125   :  { %408 = vmatmul.msk.f32.vlgmr.msra.gmra.mxu1 %vm163_vm3, %v144_v34  ;;  %409 = vmatmul.msk.f32.vlgmr.msra.gmra.mxu2 %vm163_vm3, %v144_v34 }
 0x126   :  { %410 = vmatmul.msk.f32.vlgmr.msra.gmra.mxu3 %vm163_vm3, %v144_v34  ;;  %411 = vmatmul.msk.f32.vlgmr.msrb.gmra.mxu0 %vm163_vm3, %v144_v34 }
 0x1a2   :  { %v184_v38 = vpop.f32.mrf.mxu1 }
 0x1a3   :  { %v185_v40 = vadd.f32 %v184_v38, %v155_v36  ;;  %v244_v41 = vpop.f32.mrf.mxu0 }
 0x1a4   :  { %v245_v42 = vadd.f32 %v244_v41, %v158_v37 }
 0x1a5   :  { %v249_v43 = vmul.f32 %v248_v39, %v185_v40 }
 0x1a6   :  { %v693_v45 = vmul.f32 %v248_v39, %v245_v42 }
 0x1a7   :  { %v412_v47 = vmul.f32 -1.442695, %v249_v43 }
 0x1a8   :  { %v316_v48 = vsel %vm272_vm4, %v693_v45, -inf  ;;  %v204_v49 = vpop.f32.mrf.mxu2 }
 0x1a9   :  { %427 = vpow2.f32 %v412_v47  ;;  %317 = vmax.xlane.f32.xlu1 %v316_v48  ;;  %v205_v50 = vadd.f32 %v204_v49, %v156_v44  ;;  %v224_v51 = vpop.f32.mrf.mxu3 }
 0x1aa   :  { %v225_v52 = vadd.f32 %v224_v51, %v157_v46 }
 0x1ab   :  { %v250_v53 = vmul.f32 %v248_v39, %v205_v50 }
 0x1ac   :  { %v251_v54 = vmul.f32 %v248_v39, %v225_v52 }
 0x1ad   :  { %v413_v55 = vmul.f32 -1.442695, %v250_v53 }
 0x1ae   :  { %v414_v56 = vmul.f32 -1.442695, %v251_v54 }
 0x1af   :  { %v428_v57 = vpop.eup %427  ;;  %429 = vpow2.f32 %v413_v55 }
 0x1b0   :  { %v256_v58 = vadd.f32 1.0, %v428_v57  ;;  %431 = vpow2.f32 %v414_v56 }
 0x1b2   :  { %433 = vrcp.f32 %v256_v58  ;;  %v268_v2 = vand.u32 2147483648, %v256_v58  ;;  %v266_v4 = vand.u32 2147483647, %v256_v58  ;;  %vm262_vm6 = vweird.f32 %v256_v58 }
 0x1b4   :  { %v269_v10 = vor.u32 1.1754944e-38, %v268_v2  ;;  %vm267_vm8 = vcmp.eq.f32.partialorder %v266_v4, 8.507059e+37 }
 0x1b5   :  { %v430_v59 = vpop.eup %429 }
 0x1b6   :  { %v432_v60 = vpop.eup %431  ;;  %v277_v61 = vadd.f32 1.0, %v430_v59 }
 0x1b7   :  { %v298_v62 = vadd.f32 1.0, %v432_v60 }
 0x1b8   :  { %v434_v63 = vpop.eup %433  ;;  %435 = vrcp.f32 %v277_v61  ;;  %v289_v14 = vand.u32 2147483648, %v277_v61  ;;  %v287_v17 = vand.u32 2147483647, %v277_v61  ;;  %vm283_vm11 = vweird.f32 %v277_v61 }
 0x1b9   :  { %437 = vrcp.f32 %v298_v62  ;;  %v258_v0 = vmul.f32 %v434_v63, %v256_v58  ;;  %vm263_vm5 = vweird.f32 %v434_v63  ;;  %v310_v18 = vand.u32 2147483648, %v298_v62 }
 0x1ba   :  { %vm264_vm7 = vmor %vm262_vm6, %vm263_vm5  ;;  %v308_v20 = vand.u32 2147483647, %v298_v62  ;;  %v290_v22 = vor.u32 1.1754944e-38, %v289_v14  ;;  %vm304_vm14 = vweird.f32 %v298_v62  ;;  %vm288_vm15 = vcmp.eq.f32.partialorder %v287_v17, 8.507059e+37 }
 0x1bb   :  { %v259_v1 = vsub.f32 1.0, %v258_v0  ;;  %v311_v25 = vor.u32 1.1754944e-38, %v310_v18 }
 0x1bc   :  { %vm309_vm2 = vcmp.eq.f32.partialorder %v308_v20, 8.507059e+37 }
 0x1bd   :  { %v260_v3 = vmul.f32 %v434_v63, %v259_v1 }
 0x1be   :  { %v436_v5 = vpop.eup %435 }
 0x1bf   :  { %v438_v6 = vpop.eup %437  ;;  %v279_v7 = vmul.f32 %v436_v5, %v277_v61  ;;  %v261_v8 = vadd.f32 %v434_v63, %v260_v3  ;;  %vm284_vm9 = vweird.f32 %v436_v5 }
 0x1c0   :  { %v300_v9 = vmul.f32 %v438_v6, %v298_v62  ;;  %vm305_vm10 = vweird.f32 %v438_v6  ;;  %vm285_vm12 = vmor %vm283_vm11, %vm284_vm9 }
 0x1c1   :  { %v280_v11 = vsub.f32 1.0, %v279_v7  ;;  %v265_v12 = vsel %vm264_vm7, %v434_v63, %v261_v8  ;;  %vm306_vm0 = vmor %vm304_vm14, %vm305_vm10 }
 0x1c2   :  { %v301_v13 = vsub.f32 1.0, %v300_v9  ;;  %v270_v15 = vsel %vm267_vm8, %v269_v10, %v265_v12 }
 0x1c3   :  { %v281_v16 = vmul.f32 %v436_v5, %v280_v11  ;;  %273 = vst.msk [vmem:[#allocation10] sm:$0x3] %vm272_vm4, %v270_v15 }
 0x1c4   :  { %v302_v19 = vmul.f32 %v438_v6, %v301_v13  ;;  %351 = dma.vmem_to_hbm [thread:$0]  %s347_s29, 32, %s349_s10, [#allocation6]  }
 0x1c5   :  { %v282_v21 = vadd.f32 %v436_v5, %v281_v16 }
 0x1c6   :  { %v303_v23 = vadd.f32 %v438_v6, %v302_v19 }
 0x1c7   :  { %v286_v24 = vsel %vm285_vm12, %v436_v5, %v282_v21 }
 0x1c8   :  { %v291_v26 = vsel %vm288_vm15, %v290_v22, %v286_v24  ;;  %v307_v27 = vsel %vm306_vm0, %v438_v6, %v303_v23 }
 0x1c9   :  { %294 = vst.msk [vmem:[#allocation11] sm:$0x3] %vm293_vm13, %v291_v26  ;;  %v312_v28 = vsel %vm309_vm2, %v311_v25, %v307_v27 }
 0x1ca   :  { %315 = vst.msk [vmem:[#allocation13] sm:$0x3] %vm314_vm1, %v312_v28  ;;  %362 = dma.vmem_to_hbm [thread:$0]  %s358_s27, 32, %s360_s25, [#allocation12]  }
 0x1cb   :  { %373 = dma.vmem_to_hbm [thread:$0]  %s369_s6, 32, %s371_s13, [#allocation12]  }
 0x21c   :  { %v318_v29 = vpop.xlane.xlu1 %317 }
 0x21d   :  { %v319_v30 = vsub.f32 %v693_v45, %v318_v29 }
 0x21f   :  { %v320_v31 = vmul.f32 1.442695, %v319_v30 }
 0x221   :  { %439 = vpow2.f32 %v320_v31 }
 0x227   :  { %v440_v32 = vpop.eup %439 }
 0x228   :  { %v322_v33 = vsel %vm272_vm4, %v440_v32, 0.0 }
 0x229   :  { %323 = vadd.xlane.f32.xlu1 %v322_v33 }
 0x29c   :  { %v324_v34 = vpop.xlane.xlu1 %323 }
 0x29d   :  { %441 = vrcp.f32 %v324_v34  ;;  %v336_v38 = vand.u32 2147483648, %v324_v34  ;;  %v334_v40 = vand.u32 2147483647, %v324_v34  ;;  %vm330_vm5 = vweird.f32 %v324_v34 }
 0x29f   :  { %v337_v42 = vor.u32 1.1754944e-38, %v336_v38  ;;  %vm335_vm7 = vcmp.eq.f32.partialorder %v334_v40, 8.507059e+37 }
 0x2a3   :  { %v442_v35 = vpop.eup %441 }
 0x2a4   :  { %v326_v36 = vmul.f32 %v442_v35, %v324_v34  ;;  %vm331_vm3 = vweird.f32 %v442_v35 }
 0x2a5   :  { %vm332_vm6 = vmor %vm330_vm5, %vm331_vm3 }
 0x2a6   :  { %v327_v37 = vsub.f32 1.0, %v326_v36 }
 0x2a8   :  { %v328_v39 = vmul.f32 %v442_v35, %v327_v37 }
 0x2aa   :  { %v329_v41 = vadd.f32 %v442_v35, %v328_v39 }
 0x2ac   :  { %v333_v43 = vsel %vm332_vm6, %v442_v35, %v329_v41 }
 0x2ad   :  { %v338_v44 = vsel %vm335_vm7, %v337_v42, %v333_v43 }
 0x2ae   :  { %v339_v45 = vmul.f32 %v440_v32, %v338_v44 }
 0x2b0   :  { %340 = vst.msk [vmem:[#allocation14] sm:$0x3] %vm272_vm4, %v339_v45 }
 0x2b1   :  { %384 = dma.vmem_to_hbm [thread:$0]  %s380_s7, 32, %s382_s17, [#allocation15]  }
 0x2b2   :  { %615 = dma.done.wait [#allocation6], 32  }
 0x2b3   :  { %616 = vsyncadd [#allocation6], 4294967264 }
 0x2b4   :  { %617 = dma.done.wait [#allocation12], 64  }
 0x2b5   :  { %618 = vsyncadd [#allocation12], 4294967232 }
 0x2b6   :  { %619 = dma.done.wait [#allocation15], 32  }
 0x2b7   :  { %620 = vsyncadd [#allocation15], 4294967264 }
 0x2b8   :  { %401 = vsyncpa [#allocation5], 1 }
 0x2b9   :  { %402 = vsyncpa [#allocation8], 1 }
 0x2ba   :  { %403 = vsyncpa [#allocation6], 1 }
 0x2bb   :  { %404 = vsyncpa [#allocation12], 1 }
 0x2bc   :  { %405 = vsyncpa [#allocation15], 1 }

</bundles_post_ra>
